<compile_context>
chip_gen: v7x
topology: tpu7x:2x2x1
jax: 0.10.0
libtpu: 0.0.40
codegen_flags: <defaults>
</compile_context>

<pallas_src>
import jax
import jax.numpy as jnp
from jax.experimental import pallas as pl
from jax.experimental.pallas import tpu as pltpu


# ----------------------------------------------------------------------------
# Generation-aware VMEM budgets
# ----------------------------------------------------------------------------

def _physical_vmem_bytes():
    try:
        info = pltpu.get_tpu_info()
        for attr in ("vmem_capacity_bytes", "vmem_bytes", "vmem_capacity"):
            v = getattr(info, attr, None)
            if isinstance(v, int) and v > 0:
                return v
    except Exception:
        pass
    return 64 * 1024 * 1024  # conservative fallback: v7x per-TC floor


def _vmem_budgets():
    """(per-step tile buffer budget, requested scoped-VMEM limit) in bytes."""
    phys = _physical_vmem_bytes()
    if phys >= 100 * 1024 * 1024:          # v5e / v6e: 128 MiB physical VMEM
        return 56 * 1024 * 1024, 96 * 1024 * 1024
    # v7x: 64 MiB per TensorCore -- leave headroom for Mosaic scratch
    return 24 * 1024 * 1024, 44 * 1024 * 1024


def _round_up(x, m):
    return ((x + m - 1) // m) * m


def _pick_flat_tile(N, per_elem_bytes, budget_bytes, align):
    """Largest lane-aligned flat tile whose per-step VMEM footprint fits budget.

    per_elem_bytes models the per-flat-element cost of one grid step
    (double-buffered input & output blocks + f32 accumulator temp).
    """
    max_elems = max(align, budget_bytes // per_elem_bytes)
    if N <= max_elems:
        return N                           # whole flat axis in one block
    return max(align, (max_elems // align) * align)


# ----------------------------------------------------------------------------
# Kernels
# ----------------------------------------------------------------------------

def _rs_folded_kernel(x_ref, o_ref):
    # x_ref block: (W, 1, 1, T) -- every source rank's contribution to dest r's
    #                              flat tile.  o_ref block: (1, 1, T).
    acc = jnp.sum(x_ref[...], axis=0, dtype=jnp.float32)   # (1, 1, T) in f32
    o_ref[...] = acc.astype(o_ref.dtype)


def _rs_acc_kernel(x_ref, o_ref, acc_ref):
    # Grid: (dest rank r, flat tile c, source rank k) -- k is the reduction
    # axis ("arbitrary", last).  x_ref block: (1, 1, 1, T); acc/o: (1, 1, T).
    k = pl.program_id(2)

    @pl.when(k == 0)
    def _():
        acc_ref[...] = jnp.zeros_like(acc_ref)

    acc_ref[...] += x_ref[0].astype(jnp.float32)

    @pl.when(k == pl.num_programs(2) - 1)
    def _():
        o_ref[...] = acc_ref[...].astype(o_ref.dtype)


# ----------------------------------------------------------------------------
# Wrapper
# ----------------------------------------------------------------------------

def reduce_scatter_tensor(input_stacked):
    """Emulated reduce_scatter_tensor.

    Args:
      input_stacked: [W, W*C, F] -- all ranks' input tensors stacked along a
        leading world axis.

    Returns:
      [W, C, F] -- out[r] is what torch would leave in rank r's out_tensor.
    """
    W, total, F = input_stacked.shape
    assert total % W == 0, "scatter dim must divide evenly by world size"
    C = total // W
    N = C * F                                    # flattened lane-dense axis

    in_dtype = input_stacked.dtype
    out_dtype = in_dtype
    in_sz = jnp.dtype(in_dtype).itemsize
    out_sz = jnp.dtype(out_dtype).itemsize

    tile_budget, vmem_limit = _vmem_budgets()

    # dtype-aware alignment: keep the flat tile a multiple of a fully-packed
    # vreg row (8*128 elems for f32, 2x/4x for bf16 / int8).
    pack = max(1, 4 // max(1, in_sz))
    align = 8 * 128 * pack

    # Per-flat-element VMEM cost of one grid step (double-buffered in/out
    # blocks + f32 accumulator temporary).
    folded_cost = 2 * W * in_sz + 2 * out_sz + 4
    acc_cost = 2 * in_sz + 2 * out_sz + 4

    folded_tile = _pick_flat_tile(N, folded_cost, tile_budget, align)
    # Fold W into the block only when W is small and the resulting tile is
    # still big; otherwise use the accumulator grid so DMAs stay large.
    use_folded = (W <= 8) and (folded_tile >= min(N, 32 * 1024))

    # Free (metadata-only) reshape: [W_src, W_dst, 1, C*F], lane-dense.
    x = input_stacked.reshape(W, W, 1, N)

    cost = pl.CostEstimate(
        flops=(W - 1) * W * N,
        transcendentals=0,
        bytes_accessed=W * W * N * in_sz + W * N * out_sz,
    )

    if use_folded:
        tile = folded_tile
        num_tiles = pl.cdiv(N, tile)
        # v7x megacore: avoid a 1-tile grid with odd W leaving a TC idle.
        if num_tiles == 1 and (W % 2 == 1) and N > 128:
            tile = min(N, _round_up(pl.cdiv(N, 2), 128))
            num_tiles = pl.cdiv(N, tile)

        out_flat = pl.pallas_call(
            _rs_folded_kernel,
            out_shape=jax.ShapeDtypeStruct((W, 1, N), out_dtype),
            grid_spec=pltpu.PrefetchScalarGridSpec(
                num_scalar_prefetch=0,
                grid=(W, num_tiles),                       # (dest rank, tile)
                in_specs=[
                    pl.BlockSpec((W, 1, 1, tile), lambda r, c: (0, r, 0, c)),
                ],
                out_specs=pl.BlockSpec((1, 1, tile), lambda r, c: (r, 0, c)),
            ),
            compiler_params=pltpu.CompilerParams(
                dimension_semantics=("parallel", "parallel"),
                vmem_limit_bytes=vmem_limit,
            ),
            cost_estimate=cost,
        )(x)
    else:
        tile = _pick_flat_tile(N, acc_cost, tile_budget, align)
        num_tiles = pl.cdiv(N, tile)

        out_flat = pl.pallas_call(
            _rs_acc_kernel,
            out_shape=jax.ShapeDtypeStruct((W, 1, N), out_dtype),
            grid_spec=pltpu.PrefetchScalarGridSpec(
                num_scalar_prefetch=0,
                grid=(W, num_tiles, W),                    # (dest, tile, src)
                in_specs=[
                    pl.BlockSpec((1, 1, 1, tile),
                                 lambda r, c, k: (k, r, 0, c)),
                ],
                out_specs=pl.BlockSpec((1, 1, tile),
                                       lambda r, c, k: (r, 0, c)),
                scratch_shapes=[pltpu.VMEM((1, 1, tile), jnp.float32)],
            ),
            compiler_params=pltpu.CompilerParams(
                dimension_semantics=("parallel", "parallel", "arbitrary"),
                vmem_limit_bytes=vmem_limit,
            ),
            cost_estimate=cost,
        )(x)

    return out_flat.reshape(W, C, F)


class ReduceScatterTensorPallas:
    """Mirrors the torch module's forward(out_tensor, input_tensor)."""
    # TODO(synk): true multi-chip reduce-scatter would use
    # pltpu.make_async_remote_copy over ICI; here the world is emulated by a
    # leading stacked axis on one device.

    def forward(self, out_tensor, input_stacked):
        result = reduce_scatter_tensor(input_stacked)
        assert result.shape == out_tensor.shape, (result.shape, out_tensor.shape)
        assert result.dtype == out_tensor.dtype, (result.dtype, out_tensor.dtype)
        return result


if __name__ == "__main__":
    key = jax.random.PRNGKey(0)
    mod = ReduceScatterTensorPallas()

    # --- Case 1: small world -> folded-W path. world=4, chunk rows=8, F=128.
    W, C, F = 4, 8, 128
    k1, k2 = jax.random.split(key)
    input_stacked = jax.random.normal(k1, (W, W * C, F), dtype=jnp.float32)
    out_placeholder = jnp.zeros((W, C, F), dtype=jnp.float32)

    out = mod.forward(out_placeholder, input_stacked)
    out = jax.block_until_ready(out)
    ref = jnp.sum(input_stacked.reshape(W, W, C, F), axis=0)
    assert jnp.allclose(out, ref, atol=1e-5, rtol=1e-5), "mismatch (folded path)"

    # --- Case 2: larger world -> accumulator-grid path. world=16.
    W2, C2, F2 = 16, 4, 128
    input_stacked2 = jax.random.normal(k2, (W2, W2 * C2, F2), dtype=jnp.float32)
    out_placeholder2 = jnp.zeros((W2, C2, F2), dtype=jnp.float32)

    out2 = mod.forward(out_placeholder2, input_stacked2)
    out2 = jax.block_until_ready(out2)
    ref2 = jnp.sum(input_stacked2.reshape(W2, W2, C2, F2), axis=0)
    assert jnp.allclose(out2, ref2, atol=1e-4, rtol=1e-5), "mismatch (acc path)"

    print("KERNEL_OK")
</pallas_src>

<mosaic_0001>
module attributes {stable_mosaic.version = 11 : i64} {
  func.func @_rs_folded_kernel(%arg0: i32, %arg1: i32, %arg2: memref<4x1x1x1024xf32, #tpu.memory_space<vmem>>, %arg3: memref<1x1x1024xf32, #tpu.memory_space<vmem>>) attributes {dimension_semantics = [#tpu.dimension_semantics<parallel>, #tpu.dimension_semantics<parallel>], iteration_bounds = array<i64: 4, 1>, scalar_prefetch = 0 : i64, scratch_operands = 0 : i64, tpu.core_type = #tpu.core_type<tc>, window_params = [{transform_indices = @transform_0, window_bounds = array<i64: 4, 1, 1, 1024>}, {transform_indices = @transform_1, window_bounds = array<i64: 1, 1, 1024>}]} {
    %c0 = arith.constant 0 : index
    %c0_0 = arith.constant 0 : index
    %c0_1 = arith.constant 0 : index
    %c0_2 = arith.constant 0 : index
    %0 = vector.load %arg2[%c0, %c0_0, %c0_1, %c0_2] : memref<4x1x1x1024xf32, #tpu.memory_space<vmem>>, vector<4x1x1x1024xf32>
    %cst = arith.constant dense<0.000000e+00> : vector<1x1x1024xf32>
    %1 = vector.multi_reduction <add>, %0, %cst [0] : vector<4x1x1x1024xf32> to vector<1x1x1024xf32>
    %c0_3 = arith.constant 0 : index
    %c0_4 = arith.constant 0 : index
    %c0_5 = arith.constant 0 : index
    %2 = vector.load %arg3[%c0_3, %c0_4, %c0_5] : memref<1x1x1024xf32, #tpu.memory_space<vmem>>, vector<1x1x1024xf32>
    tpu.vector_store %arg3[%c0_3, %c0_4, %c0_5], %1 {strides = array<i32>} : memref<1x1x1024xf32, #tpu.memory_space<vmem>>, vector<1x1x1024xf32>,
    return
  }
  func.func @transform_0(%arg0: i32, %arg1: i32) -> (i32, i32, i32, i32) {
    %c0_i32 = arith.constant 0 : i32
    %c0_i32_0 = arith.constant 0 : i32
    %c0_i32_1 = arith.constant 0 : i32
    return %c0_i32, %arg0, %c0_i32_0, %arg1 : i32, i32, i32, i32
  }
  func.func @transform_1(%arg0: i32, %arg1: i32) -> (i32, i32, i32) {
    %c0_i32 = arith.constant 0 : i32
    %c0_i32_0 = arith.constant 0 : i32
    return %arg0, %c0_i32, %arg1 : i32, i32, i32
  }
}

</mosaic_0001>

<bundles_post_ra>
// kernel: tpu_custom_call.1
= control target key start
LH: loop header
LB: loop body
LE: loop exit
PB: predicated region body
PF: predicated region fallthrough
CT: control target
= control target key end

     0   :  { %6 = vsyncpa [#allocation3], 0  ;;  %s1048_s0 = inlined_call_operand.hbm [shape: f32[4,4,1,1024], index: 0, kind: input, shape index: {}]   ;;  %s1049_s1 = inlined_call_operand.hbm [shape: f32[4,1,1024], index: 1, kind: output, shape index: {}]  }
   0x1   :  { %8 = vsyncpa [#allocation3 + $0x1], 0 }
   0x2   :  { %9 = vsyncpa [#allocation4], 0 }
   0x3   :  { %11 = vsyncpa [#allocation4 + $0x1], 0  ;;  %s753_s6 = smov 0   ;;  %s755_s7 = smov 0  }
   0x4   :  { %s757_s8 = smov 0   ;;  %s759_s9 = smov 0  }
   0x5   :  { %s761_s10 = smov 0   ;;  %s763_s11 = smov 0  }
   0x6 LB: > { %s540_s12 = sadd.s32 4294967295, %s735_s11   ;;  %s541_s13 = sadd.s32 4294967294, %s735_s11   ;;  %s735_s11 = sphi %s763_s11, %s17_s11   ;;  %s731_s10 = sphi %s761_s10, %s1062_s10   ;;  %s727_s9 = sphi %s759_s9, %s1061_s9   ;;  %s723_s8 = sphi %s757_s8, %s1060_s8   ;;  %s719_s7 = sphi %s755_s7, %s1059_s7   ;;  %s715_s6 = sphi %s753_s6, %s1058_s6  }
   0x7   : > { %s29_s14 = sadd.s32 1, %s731_s10  ;;  %s38_s15 = sadd.s32 1, %s723_s8 }
   0x8   : > { %p31_p0 = scmp.ge.s32.totalorder %s29_s14, 4  ;;  %p45_p1 = scmp.ne.s32.totalorder %s723_s8, %s719_s7 }
   0x9   : > { %p46_p2 = scmp.eq.s32.totalorder %s735_s11, 0  ;;  %p51_p3 = scmp.ne.s32.totalorder %s719_s7, %s715_s6 }
   0xa   : > { %s1064_s14 = smov (%p31_p0, %s29_s14), 0  ;;  %p52_p5 = scmp.eq.s32.totalorder %s540_s12, 0 }
   0xb   : > { %p794_p4 = por %p46_p2, %p45_p1  ;;  %s33_s17 = ssub.s32 %s731_s10, %s1064_s14 }
   0xc   : > { %p77_p6 = scmp.eq.s32.totalorder %s540_s12, 3  ;;  %p36_p7 = scmp.eq.s32.totalorder %s33_s17, 0 }
   0xd   : > { %p800_p8 = por %p52_p5, %p51_p3  ;;  %p83_p10 = scmp.eq.s32.totalorder %s541_s13, 3 }
   0xe   : > { %p804_p9 = por %p77_p6, %p45_p1  ;;  %p569_p12 = scmp.lt.s32.totalorder %s735_s11, 4 }
   0xf   : > { %s809_s20 = scalar_select %p36_p7, %s723_s8, %s38_s15  }
  0x10   : > { %s1053_s19 = scalar_select %p804_p9, 1, 0 }
  0x11   : > { %p811_p11 = por %p83_p10, %p51_p3  ;;  %s103_s22 = sand.u32 1, %s723_s8  }
  0x12   : > { %s544_s23 = sshll.u32 %s103_s22, 5  ;;  %s555_s24 = sshll.u32 %s731_s10, 7 }
  0x13   : > { %s1054_s21 = scalar_select %p811_p11, 1, 0 }
  0x14   : > { %s821_s27 = scalar_lea.hbm %s1048_s0, %s555_s24  ;;  %s107_s28 = scalar_lea.vmem [#allocation2], %s544_s23 }
  0x15   : > { %s116_s29 = sshll.u32 %s107_s28, 4  ;;  %p827_p13 = pnand %p569_p12, %p794_p4  ;;  %s823_s29 = int_to_ptr.vmem [resolvable:$true] %s116_s29 }
  0x16   : > { %s831_s2 = scalar_lea.sflag [#allocation3], %s103_s22  ;;  %s623_s3 = scalar_lea.hbm %s821_s27, 512 }
  0x17   : > { %p624_p0 = scmp.ne.s32.totalorder %s821_s27, %s623_s3  ;;  %p625_p1 = pneg %p827_p13 }
  0x18   : > { %s628_s12 = scalar_lea.hbm %s1048_s0, 2048  ;;  %p629_p4 = scmp.lt.u32.totalorder %s821_s27, %s1048_s0 }
  0x19   : > { %p626_p2 = pnand %p625_p1, %p624_p0  ;;  %p630_p5 = scmp.lt.u32.totalorder %s628_s12, %s623_s3 }
  0x1a   : > { %p632_p7 = scmp.lt.u32.totalorder %s623_s3, %s821_s27 }
  0x1b   : > { %p627_p3 = pneg %p626_p2  ;;  %p631_p6 = por %p630_p5, %p629_p4 }
  0x1d   : > { %p633_p10 = por %p632_p7, %p631_p6 }
  0x1f   : > { %p634_p12 = pnand %p633_p10, %p627_p3 }
  0x21   : > { %637 = shalt.err (!%p634_p12)
}
  0x22   : > { %s638_s16 = scalar_lea.vmem %s823_s29, 512  ;;  %s737_s17 = smov [#allocation2]  }
  0x23   : > { %p639_p0 = scmp.ne.s32.totalorder %s823_s29, %s638_s16  ;;  %s643_s22 = sshll.u32 %s737_s17, 4  ;;  %s644_s22 = int_to_ptr.vmem [resolvable:$false] %s643_s22 }
  0x24   : > { %s645_s23 = scalar_lea.vmem %s644_s22, 1024  ;;  %p646_p9 = scmp.lt.s32.totalorder %s823_s29, %s644_s22 }
  0x25   : > { %p641_p2 = pnand %p639_p0, %p625_p1  ;;  %p647_p4 = scmp.lt.s32.totalorder %s645_s23, %s638_s16 }
  0x27   : > { %p642_p11 = pneg %p641_p2  ;;  %p648_p5 = por %p647_p4, %p646_p9 }
  0x29   : > { %p649_p6 = pnand %p648_p5, %p642_p11 }
  0x2b   : > { %652 = shalt.err (!%p649_p6)
}
  0x2c   : > { %s738_s24 = smov 512   ;;  %s739_s25 = smov 128  }
  0x2d   : > { %s740_s26 = smov 8   ;;  %p547_p1 = scmp.ge.s32.totalorder %s735_s11, 1 }
  0x2e   : > { %564 = dma.hbm_to_vmem [thread:$0]  (!%p827_p13), %s821_s27, 512, %s823_s29, %s831_s2, %s738_s24, %s739_s25, %s740_s26  }
  0x2f   : > { %p124_p3 = scmp.lt.s32.totalorder %s735_s11, 5 }
  0x31   : > { %p125_p7 = pnand %p547_p1, %p124_p3 }
  0x32   : > { %s862_s28 = sand.u32 (!%p125_p7), 1, %s719_s7  }
  0x33   : > { %128 = sbr.rel (%p125_p7) target bundleno = 115 (0x73), region = 24  ;;  %s548_s3 = sshll.u32 (!%p125_p7), %s862_s28, 5 }
  0x34   : > { %s131_s4 = scalar_lea.sflag (!%p125_p7), [#allocation3], %s862_s28  ;;  %s866_s5 = scalar_lea.vmem (!%p125_p7), [#allocation2], %s548_s3 }
  0x3a   : > { %706 = dma.done.wait (%p800_p8), %s131_s4, 512  }
  0x3b   : > { %708 = vsyncadd (%p800_p8), %s131_s4, 4294966784  ;;  %v163_v0 = vlaneseq  ;;  %v741_v1 = vmov 1966171168   ;;  %v883_v13 = vld [vmem:[%s866_s5] sm:$0xff]  ;;  %v886_v14 = vld [vmem:[%s866_s5 + $0x8] sm:$0xff]  ;;  %vm323_vm0 = vcmask 1040384  }
  0x3c   : > { %v393_v2 = vunpack.c.l.s4 %v741_v1  ;;  %v894_v19 = vld [vmem:[%s866_s5 + $0x10] sm:$0xff]  ;;  %v910_v28 = vld [vmem:[%s866_s5 + $0x18] sm:$0xff]  ;;  %s549_s18 = sshll.u32 %s862_s28, 3  ;;  %s556_s30 = sshll.u32 %s727_s9, 7 }
  0x3d   : > { %v164_v3 = vshrl.u32 %v163_v0, 7  ;;  %s152_s27 = scalar_lea.vmem [#allocation5], %s549_s18  ;;  %s1002_s13 = scalar_lea.hbm %s1049_s1, %s556_s30 }
  0x3e   : > { %v394_v7 = vunpack.c.0.s8 %v393_v2  ;;  %s456_s29 = sshll.u32 %s152_s27, 4  ;;  %s440_s15 = scalar_lea.sflag [#allocation4], %s862_s28  ;;  %s997_s29 = int_to_ptr.vmem [resolvable:$true] %s456_s29 }
  0x3f   : > { %v165_v4 = vsub.s32 0, %v164_v3  ;;  %v169_v5 = vsub.s32 1, %v164_v3  ;;  %v173_v6 = vsub.s32 2, %v164_v3  ;;  %v872_v8 = vsub.s32 3, %v164_v3  ;;  %s653_s16 = scalar_lea.vmem %s997_s29, 128  ;;  %p1056_p9 = scmp.ne.s32.totalorder %s1053_s19, 0 }
  0x40   : > { %v874_v9 = vsub.s32 4, %v164_v3  ;;  %v876_v10 = vsub.s32 5, %v164_v3  ;;  %v878_v11 = vsub.s32 6, %v164_v3  ;;  %v880_v12 = vsub.s32 7, %v164_v3  ;;  %p654_p8 = scmp.ne.s32.totalorder %s997_s29, %s653_s16  ;;  %s742_s9 = smov [#allocation5]  }
  0x41   : > { %v166_v15 = vrot.slane %v883_v13, %v165_v4  ;;  %v170_v16 = vrot.slane %v883_v13, %v169_v5  ;;  %v174_v17 = vrot.slane %v883_v13, %v173_v6  ;;  %v891_v18 = vsub.s32 %v394_v7, %v164_v3  ;;  %s657_s17 = sshll.u32 %s742_s9, 4  ;;  %s658_s17 = int_to_ptr.vmem [resolvable:$false] %s657_s17 }
  0x42   : > { %v178_v20 = vrot.slane %v883_v13, %v872_v8  ;;  %v182_v21 = vrot.slane %v883_v13, %v874_v9  ;;  %v186_v22 = vrot.slane %v883_v13, %v876_v10  ;;  %v190_v23 = vrot.slane %v883_v13, %v878_v11  ;;  %p655_p11 = pnand %p654_p8, %p1056_p9  ;;  %s659_s22 = scalar_lea.vmem %s658_s17, 256 }
  0x43   : > { %v194_v24 = vrot.slane %v883_v13, %v880_v12  ;;  %v198_v25 = vrot.slane %v886_v14, %v165_v4  ;;  %v202_v26 = vrot.slane %v886_v14, %v169_v5  ;;  %v206_v27 = vrot.slane %v886_v14, %v173_v6  ;;  %p660_p10 = scmp.lt.s32.totalorder %s997_s29, %s658_s17  ;;  %p661_p12 = scmp.lt.s32.totalorder %s659_s22, %s653_s16 }
  0x44   : > { %v210_v29 = vrot.slane %v886_v14, %v872_v8  ;;  %v214_v30 = vrot.slane %v886_v14, %v874_v9  ;;  %v218_v31 = vrot.slane %v886_v14, %v876_v10  ;;  %v222_v32 = vrot.slane %v886_v14, %v878_v11  ;;  %p656_p13 = pneg %p655_p11 }
  0x45   : > { %v226_v33 = vrot.slane %v886_v14, %v880_v12  ;;  %v230_v34 = vrot.slane %v894_v19, %v165_v4  ;;  %v234_v35 = vrot.slane %v894_v19, %v169_v5  ;;  %v238_v36 = vrot.slane %v894_v19, %v173_v6  ;;  %p662_p0 = por %p661_p12, %p660_p10 }
  0x46   : > { %v242_v37 = vrot.slane %v894_v19, %v872_v8  ;;  %v246_v38 = vrot.slane %v894_v19, %v874_v9  ;;  %v250_v39 = vrot.slane %v894_v19, %v876_v10  ;;  %v254_v40 = vrot.slane %v894_v19, %v878_v11 }
  0x47   : > { %v258_v41 = vrot.slane %v894_v19, %v880_v12  ;;  %v262_v42 = vrot.slane %v910_v28, %v165_v4  ;;  %v266_v43 = vrot.slane %v910_v28, %v169_v5  ;;  %v270_v44 = vrot.slane %v910_v28, %v173_v6  ;;  %p663_p2 = pnand %p662_p0, %p656_p13 }
  0x48   : > { %v274_v45 = vrot.slane %v910_v28, %v872_v8  ;;  %v278_v46 = vrot.slane %v910_v28, %v874_v9  ;;  %v282_v47 = vrot.slane %v910_v28, %v876_v10  ;;  %v286_v48 = vrot.slane %v910_v28, %v878_v11 }
  0x49   : > { %v324_v49 = vsel %vm323_vm0, %v166_v15, 0.0  ;;  %v325_v50 = vsel %vm323_vm0, %v198_v25, 0.0  ;;  %v327_v51 = vsel %vm323_vm0, %v230_v34, 0.0  ;;  %v329_v52 = vsel %vm323_vm0, %v262_v42, 0.0 }
  0x4a   : > { %v326_v53 = vadd.f32 %v325_v50, %v324_v49  ;;  %v331_v54 = vsel %vm323_vm0, %v170_v16, 0.0  ;;  %v332_v55 = vsel %vm323_vm0, %v202_v26, 0.0  ;;  %v334_v56 = vsel %vm323_vm0, %v234_v35, 0.0 }
  0x4b   : > { %v333_v57 = vadd.f32 %v332_v55, %v331_v54  ;;  %v336_v58 = vsel %vm323_vm0, %v266_v43, 0.0  ;;  %v338_v59 = vsel %vm323_vm0, %v174_v17, 0.0  ;;  %v339_v60 = vsel %vm323_vm0, %v206_v27, 0.0 }
  0x4c   : > { %v328_v61 = vadd.f32 %v327_v51, %v326_v53  ;;  %v340_v62 = vadd.f32 %v339_v60, %v338_v59  ;;  %v341_v63 = vsel %vm323_vm0, %v238_v36, 0.0  ;;  %v343_v0 = vsel %vm323_vm0, %v270_v44, 0.0 }
  0x4d   : > { %v335_v1 = vadd.f32 %v334_v56, %v333_v57  ;;  %v345_v2 = vsel %vm323_vm0, %v178_v20, 0.0  ;;  %v346_v3 = vsel %vm323_vm0, %v210_v29, 0.0  ;;  %v348_v4 = vsel %vm323_vm0, %v242_v37, 0.0 }
  0x4e   : > { %v290_v5 = vrot.slane %v910_v28, %v880_v12  ;;  %v330_v6 = vadd.f32 %v329_v52, %v328_v61  ;;  %v342_v7 = vadd.f32 %v341_v63, %v340_v62  ;;  %v347_v8 = vadd.f32 %v346_v3, %v345_v2 }
  0x4f   : > { %v350_v9 = vsel %vm323_vm0, %v274_v45, 0.0  ;;  %v352_v10 = vsel %vm323_vm0, %v182_v21, 0.0  ;;  %v353_v15 = vsel %vm323_vm0, %v214_v30, 0.0  ;;  %v355_v16 = vsel %vm323_vm0, %v246_v38, 0.0 }
  0x50   : > { %v337_v17 = vadd.f32 %v336_v58, %v335_v1  ;;  %v344_v19 = vadd.f32 %v343_v0, %v342_v7  ;;  %v349_v20 = vadd.f32 %v348_v4, %v347_v8  ;;  %v354_v25 = vadd.f32 %v353_v15, %v352_v10 }
  0x51   : > { %v357_v26 = vsel %vm323_vm0, %v278_v46, 0.0  ;;  %v359_v27 = vsel %vm323_vm0, %v186_v22, 0.0  ;;  %v360_v28 = vsel %vm323_vm0, %v218_v31, 0.0  ;;  %v362_v29 = vsel %vm323_vm0, %v250_v39, 0.0 }
  0x52   : > { %v351_v34 = vadd.f32 %v350_v9, %v349_v20  ;;  %v356_v35 = vadd.f32 %v355_v16, %v354_v25  ;;  %v361_v36 = vadd.f32 %v360_v28, %v359_v27  ;;  %v366_v21 = vsel %vm323_vm0, %v190_v23, 0.0 }
  0x53   : > { %v364_v30 = vsel %vm323_vm0, %v282_v47, 0.0  ;;  %v367_v37 = vsel %vm323_vm0, %v222_v32, 0.0  ;;  %v369_v38 = vsel %vm323_vm0, %v254_v40, 0.0  ;;  %v373_v22 = vsel %vm323_vm0, %v194_v24, 0.0 }
  0x54   : > { %v358_v31 = vadd.f32 %v357_v26, %v356_v35  ;;  %v363_v39 = vadd.f32 %v362_v29, %v361_v36  ;;  %v368_v42 = vadd.f32 %v367_v37, %v366_v21  ;;  %v374_v11 = vsel %vm323_vm0, %v226_v33, 0.0 }
  0x55   : > { %v371_v23 = vsel %vm323_vm0, %v286_v48, 0.0  ;;  %v375_v43 = vadd.f32 %v374_v11, %v373_v22  ;;  %v376_v32 = vsel %vm323_vm0, %v258_v41, 0.0  ;;  %v388_v40 = vcombine.low %v330_v6, %v337_v17 }
  0x56   : > { %v365_v44 = vadd.f32 %v364_v30, %v363_v39  ;;  %v370_v45 = vadd.f32 %v369_v38, %v368_v42  ;;  %v378_v13 = vsel %vm323_vm0, %v290_v5, 0.0  ;;  %v389_v24 = vcombine.low %v344_v19, %v351_v34 }
  0x57   : > { %v377_v46 = vadd.f32 %v376_v32, %v375_v43  ;;  %v398_v47 = vrot.slane %v388_v40, %v891_v18 }
  0x58   : > { %v372_v49 = vadd.f32 %v371_v23, %v370_v45  ;;  %v390_v12 = vcombine.low %v358_v31, %v365_v44  ;;  %v405_v14 = vrot.slane %v389_v24, %v891_v18 }
  0x59   : > { %v379_v33 = vadd.f32 %v378_v13, %v377_v46 }
  0x5a   : > { %v412_v41 = vrot.slane %v390_v12, %v891_v18  ;;  %v420_v50 = vcombine.low %v398_v47, %v405_v14 }
  0x5b   : > { %v391_v48 = vcombine.low %v372_v49, %v379_v33 }
  0x5c   : > { %v428_v53 = vrot.slane %v420_v50, %v891_v18 }
  0x5d   : > { %v419_v51 = vrot.slane %v391_v48, %v891_v18 }
  0x5f   : > { %v421_v52 = vcombine.low %v412_v41, %v419_v51 }
  0x61   : > { %v435_v54 = vrot.slane %v421_v52, %v891_v18 }
  0x63   : > { %v436_v55 = vcombine.low %v428_v53, %v435_v54 }
  0x65   : > { %438 = vst [vmem:[%s152_s27] sm:$0xff] %v436_v55 }
  0x66   : > { %666 = shalt.err (!%p663_p2)
}
  0x67   : > { %s667_s23 = scalar_lea.hbm %s1002_s13, 128  ;;  %s671_s26 = scalar_lea.hbm %s1049_s1, 512 }
  0x68   : > { %p668_p4 = scmp.ne.s32.totalorder %s1002_s13, %s667_s23  ;;  %p672_p1 = scmp.lt.u32.totalorder %s1002_s13, %s1049_s1 }
  0x69   : > { %p673_p3 = scmp.lt.u32.totalorder %s671_s26, %s667_s23  ;;  %p675_p8 = scmp.lt.u32.totalorder %s667_s23, %s1002_s13 }
  0x6a   : > { %p669_p5 = pnand %p668_p4, %p1056_p9 }
  0x6b   : > { %p674_p7 = por %p673_p3, %p672_p1 }
  0x6c   : > { %p670_p6 = pneg %p669_p5 }
  0x6d   : > { %p676_p11 = por %p675_p8, %p674_p7 }
  0x6f   : > { %p677_p13 = pnand %p676_p11, %p670_p6 }
  0x71   : > { %680 = shalt.err (!%p677_p13)
}
  0x72   : > { %559 = dma.vmem_to_hbm [thread:$0]  (%p1056_p9), %s997_s29, 128, %s1002_s13, %s440_s15  }
  0x73 PF: > { %p570_p10 = scmp.ge.s32.totalorder %s735_s11, 2  ;;  %s468_s4 = sand.u32 1, %s715_s6  }
  0x74   : > { %p1057_p12 = scmp.ne.s32.totalorder %s1054_s21, 0  ;;  %s469_s5 = scalar_lea.sflag [#allocation4], %s468_s4 }
  0x76   : > { %p566_p0 = pnand %p570_p10, %p1057_p12 }
  0x78   : > { %710 = dma.done.wait (!%p566_p0), %s469_s5, 128  }
  0x79   : > { %712 = vsyncadd (!%p566_p0), %s469_s5, 4294967168  ;;  %s17_s11 = sadd.s32 1, %s735_s11   ;;  %s1058_s6 = smov %s719_s7 }
  0x7a   : > { %p14_p2 = scmp.ge.s32.totalorder %s17_s11, 6   ;;  %s1059_s7 = smov %s723_s8 }
  0x7b   : > { %s1060_s8 = smov %s809_s20  ;;  %s1061_s9 = smov %s731_s10 }
  0x7c   : > { %s1062_s10 = smov %s1064_s14  ;;  %16 = sbr.rel (!%p14_p2) target bundleno = 6 (0x6), region = 69 }
  0x83   :  { %474 = vsyncpa [#allocation3], 1 }
  0x84   :  { %476 = vsyncpa [#allocation3 + $0x1], 1 }
  0x85   :  { %477 = vsyncpa [#allocation4], 1 }
  0x86   :  { %479 = vsyncpa [#allocation4 + $0x1], 1 }

</bundles_post_ra>
